<compile_context>
chip_gen: v7x
topology: tpu7x:2x2x1
jax: 0.10.0
libtpu: 0.0.40
codegen_flags: <defaults>
</compile_context>

<pallas_src>
import functools

import jax
import jax.numpy as jnp
from jax import lax
from jax.experimental import pallas as pl
from jax.experimental.pallas import tpu as pltpu

_LANE = 128
_SUBLANE = 8


def _round_up(x, m):
    return (x + m - 1) // m * m


def _cdiv(a, b):
    return (a + b - 1) // b


def _choose_lane_width(total, block_cols):
    cands = [c for c in (1024, 512, 256, 128) if c <= block_cols] or [_LANE]
    for c in cands:                      # largest divisor giving >= 8 rows
        if total % c == 0 and total // c >= _SUBLANE:
            return c
    for c in cands:                      # any divisor -> no padding needed
        if total % c == 0:
            return c
    return cands[-1]                     # fallback: minimal (< d elem) pad


def _focal_kernel(preds_ref, targets_ref, out_ref, *, delta, gamma,
                  hard_targets, total, d, br, strip, bps, num_blocks,
                  apply_mask):
    c = pl.program_id(0)                 # core-split axis ("parallel")
    i = pl.program_id(1)                 # block axis ("arbitrary", accumulate)
    gb = c * bps + i                     # global block index
    block_row0 = gb * br

    @pl.when(i == 0)
    def _init():
        out_ref[...] = jnp.zeros_like(out_ref)

    one_m_delta = 1.0 - delta

    def _pow_gamma(p):
        if isinstance(gamma, int):
            return lax.integer_pow(p, gamma)     # VPU multiplies, no EUP pow
        return p ** gamma

    def _strip_loss(x, t):
        if hard_targets:
            # {0,1} labels only: one log_sigmoid + one tanh (3 EUP/elem).
            pos = t > 0.5
            log_term = jax.nn.log_sigmoid(jnp.where(pos, x, 1.0 - x))
            p = 0.5 * (1.0 + jnp.tanh(0.5 * x))          # sigmoid(x)
            return jnp.where(pos, (-delta) * log_term,
                             (-one_m_delta) * _pow_gamma(p) * log_term)
        # Generic (soft-target) path, faithful to the PyTorch module:
        #   P = sigmoid(x); log_P = logsigmoid(x); log_P_ = logsigmoid(1 - x)
        log_p = jax.nn.log_sigmoid(x)
        p = jnp.exp(log_p)                               # sigmoid(x)
        log_p_ = jax.nn.log_sigmoid(1.0 - x)
        return ((-delta) * log_p * t
                - one_m_delta * _pow_gamma(p) * log_p_ * (1.0 - t))

    # Mask constants for the (only possible) ragged / padded last block.
    # Two-term (row, col) compare -> no int32 flat-index overflow.
    last_row = (total - 1) // d
    rem = total - last_row * d           # valid lanes in the last data row
    row_ids = lax.broadcasted_iota(jnp.int32, (strip, d), 0)
    col_ids = lax.broadcasted_iota(jnp.int32, (strip, d), 1)

    def _block_sum(masked):
        def body(s, acc):
            r0 = pl.multiple_of(s * strip, strip)
            x = preds_ref[pl.ds(r0, strip), :].astype(jnp.float32)
            t = targets_ref[pl.ds(r0, strip), :].astype(jnp.float32)
            bl = _strip_loss(x, t)
            if masked:
                grow = block_row0 + r0 + row_ids
                valid = (grow < last_row) | ((grow == last_row)
                                             & (col_ids < rem))
                bl = jnp.where(valid, bl, 0.0)
            # Fold sublane groups with VPU adds; keep an (8, d) lane-dense
            # partial so the accumulator store stays an unmasked vst.
            return acc + jnp.sum(
                bl.reshape(strip // _SUBLANE, _SUBLANE, d), axis=0)

        return lax.fori_loop(0, br // strip, body,
                             jnp.zeros((_SUBLANE, d), jnp.float32))

    if apply_mask:
        is_last = gb == num_blocks - 1
        @pl.when(is_last)
        def _masked():
            out_ref[...] += _block_sum(True)
        @pl.when(jnp.logical_not(is_last))
        def _unmasked():
            out_ref[...] += _block_sum(False)
    else:
        out_ref[...] += _block_sum(False)


def binary_focal_loss(preds, targets, *, delta=0.7, gamma=3,
                      hard_targets=False, block_rows=1024, block_cols=1024):
    assert preds.shape == targets.shape
    n = preds.shape[0]
    total = preds.size

    # Lane-dense 2-D layout: (rows, d), d a multiple of 128 chosen to divide
    # `total` whenever possible (no jnp.pad copy on that path).
    d = _choose_lane_width(total, block_cols)
    rows = _cdiv(total, d)
    padded_total = rows * d

    flat_p = preds.reshape(-1)
    flat_t = targets.reshape(-1)
    if padded_total != total:
        # Rare fallback (no lane width in {1024..128} divides `total`):
        # pad < d elements; the in-kernel mask zeroes their contribution.
        flat_p = jnp.pad(flat_p, (0, padded_total - total))
        flat_t = jnp.pad(flat_t, (0, padded_total - total))
    p2 = flat_p.reshape(rows, d)
    t2 = flat_t.reshape(rows, d)

    br = _round_up(min(max(block_rows, _SUBLANE), _round_up(rows, _SUBLANE)),
                   _SUBLANE)
    # Largest strip (<= 256 sublane rows) dividing the block: bounds the live
    # elementwise intermediates inside the in-kernel fori_loop reduce.
    strip = next(s for s in (256, 128, 64, 32, 16, 8) if br % s == 0)
    num_blocks = _cdiv(rows, br)
    # Two-way split of the block range: outer "parallel" axis lets v7x's two
    # TensorCores take one half each (each owns its own accumulator block).
    num_splits = 2 if (num_blocks >= 2 and num_blocks % 2 == 0) else 1
    bps = num_blocks // num_splits
    apply_mask = (padded_total != total) or (rows % br != 0)

    kernel = functools.partial(
        _focal_kernel,
        delta=float(delta), gamma=gamma, hard_targets=hard_targets,
        total=total, d=d, br=br, strip=strip, bps=bps,
        num_blocks=num_blocks, apply_mask=apply_mask)

    out_bytes = num_splits * _SUBLANE * d * 4
    cost = pl.CostEstimate(
        flops=14 * padded_total,
        transcendentals=(3 if hard_targets else 5) * padded_total,
        bytes_accessed=(p2.size * p2.dtype.itemsize
                        + t2.size * t2.dtype.itemsize + out_bytes),
    )

    partials = pl.pallas_call(
        kernel,
        out_shape=jax.ShapeDtypeStruct((num_splits * _SUBLANE, d), jnp.float32),
        grid_spec=pltpu.PrefetchScalarGridSpec(
            num_scalar_prefetch=0,
            grid=(num_splits, bps),
            in_specs=[
                pl.BlockSpec((br, d), lambda c, i: (c * bps + i, 0)),
                pl.BlockSpec((br, d), lambda c, i: (c * bps + i, 0)),
            ],
            out_specs=pl.BlockSpec((_SUBLANE, d), lambda c, i: (c, 0)),
        ),
        compiler_params=pltpu.CompilerParams(
            dimension_semantics=("parallel", "arbitrary"),
            vmem_limit_bytes=48 * 1024 * 1024,
        ),
        cost_estimate=cost,
    )(p2, t2)

    # size_average=False path: sum over (C,H,W) per sample, mean over batch
    # == total_sum / N.  Epilogue reduce is only (num_splits*8, d) elements.
    return jnp.sum(partials) / jnp.float32(n)


def binary_focal_loss_ref(preds, targets, *, delta=0.7, gamma=3):
    """Pure-JAX reference mirroring the PyTorch module."""
    x = preds.astype(jnp.float32)
    t = targets.astype(jnp.float32)
    p = jax.nn.sigmoid(x)
    log_p = jax.nn.log_sigmoid(x)
    log_p_ = jax.nn.log_sigmoid(1.0 - x)
    bl = -delta * log_p * t - (1.0 - delta) * (p ** gamma) * log_p_ * (1.0 - t)
    per_sample = jnp.sum(bl, axis=(1, 2, 3))
    return jnp.mean(per_sample)


if __name__ == "__main__":
    key = jax.random.PRNGKey(0)
    k1, k2, k3, k4, k5, k6 = jax.random.split(key, 6)

    # --- main test: small NCHW shape consistent with the module -------------
    preds = jax.random.normal(k1, (2, 4, 16, 16), dtype=jnp.float32)
    targets = (jax.random.uniform(k2, (2, 4, 16, 16)) > 0.5).astype(jnp.float32)

    loss = jax.block_until_ready(binary_focal_loss(preds, targets))
    ref = binary_focal_loss_ref(preds, targets)
    assert jnp.allclose(loss, ref, rtol=1e-5, atol=1e-5), (loss, ref)

    # hard-target EUP-reduced path ({0,1} labels only).
    loss_h = jax.block_until_ready(
        binary_focal_loss(preds, targets, hard_targets=True))
    assert jnp.allclose(loss_h, ref, rtol=1e-4, atol=1e-5), (loss_h, ref)

    # --- awkward size: exercises the minimal-pad + gated tail-mask path -----
    preds2 = jax.random.normal(k3, (2, 3, 17, 19), dtype=jnp.float32)
    targets2 = (jax.random.uniform(k4, (2, 3, 17, 19)) > 0.5).astype(jnp.float32)
    l2 = jax.block_until_ready(binary_focal_loss(preds2, targets2))
    r2 = binary_focal_loss_ref(preds2, targets2)
    assert jnp.allclose(l2, r2, rtol=1e-5, atol=1e-5), (l2, r2)

    # --- multi-block accumulator + 2-way core split --------------------------
    preds3 = jax.random.normal(k5, (2, 4, 64, 64), dtype=jnp.float32)
    targets3 = (jax.random.uniform(k6, (2, 4, 64, 64)) > 0.5).astype(jnp.float32)
    l3 = jax.block_until_ready(binary_focal_loss(preds3, targets3, block_rows=8))
    r3 = binary_focal_loss_ref(preds3, targets3)
    assert jnp.allclose(l3, r3, rtol=1e-5, atol=1e-5), (l3, r3)

    # --- ragged last block + split + mask ------------------------------------
    preds4 = jax.random.normal(k1, (2, 4, 60, 64), dtype=jnp.float32)
    targets4 = (jax.random.uniform(k2, (2, 4, 60, 64)) > 0.5).astype(jnp.float32)
    l4 = jax.block_until_ready(binary_focal_loss(preds4, targets4, block_rows=16))
    r4 = binary_focal_loss_ref(preds4, targets4)
    assert jnp.allclose(l4, r4, rtol=1e-5, atol=1e-5), (l4, r4)

    print("KERNEL_OK")
</pallas_src>

<mosaic_0001>
module attributes {stable_mosaic.version = 11 : i64} {
  func.func @_focal_kernel(%arg0: i32, %arg1: i32, %arg2: memref<8x256xf32, #tpu.memory_space<vmem>>, %arg3: memref<8x256xf32, #tpu.memory_space<vmem>>, %arg4: memref<8x256xf32, #tpu.memory_space<vmem>>) attributes {dimension_semantics = [#tpu.dimension_semantics<parallel>, #tpu.dimension_semantics<arbitrary>], iteration_bounds = array<i64: 1, 1>, scalar_prefetch = 0 : i64, scratch_operands = 0 : i64, tpu.core_type = #tpu.core_type<tc>, window_params = [{transform_indices = @transform_0, window_bounds = array<i64: 8, 256>}, {transform_indices = @transform_1, window_bounds = array<i64: 8, 256>}, {transform_indices = @transform_2, window_bounds = array<i64: 8, 256>}]} {
    %c0_i32 = arith.constant 0 : i32
    %0 = arith.cmpi eq, %arg1, %c0_i32 : i32
    %1 = arith.extui %0 : i1 to i32
    %c0_i32_0 = arith.constant 0 : i32
    %2 = arith.cmpi ne, %1, %c0_i32_0 : i32
    scf.if %2 {
      %cst_20 = arith.constant 0.000000e+00 : f32
      %67 = vector.broadcast %cst_20 : f32 to vector<8x256xf32>
      %c0_21 = arith.constant 0 : index
      %c0_22 = arith.constant 0 : index
      %68 = vector.load %arg4[%c0_21, %c0_22] : memref<8x256xf32, #tpu.memory_space<vmem>>, vector<8x256xf32>
      tpu.vector_store %arg4[%c0_21, %c0_22], %67 {strides = array<i32>} : memref<8x256xf32, #tpu.memory_space<vmem>>, vector<8x256xf32>,
    } else {
    }
    %c0 = arith.constant 0 : index
    %c0_1 = arith.constant 0 : index
    %3 = vector.load %arg4[%c0, %c0_1] : memref<8x256xf32, #tpu.memory_space<vmem>>, vector<8x256xf32>
    %cst = arith.constant 0.000000e+00 : f32
    %4 = vector.broadcast %cst : f32 to vector<8x256xf32>
    %c0_i32_2 = arith.constant 0 : i32
    %c8_i32 = arith.constant 8 : i32
    %5 = arith.muli %c0_i32_2, %c8_i32 : i32
    %6 = tpu.assume_multiple %5, 8 : i32
    %7 = arith.index_cast %6 : i32 to index
    %c0_3 = arith.constant 0 : index
    %8 = vector.load %arg2[%7, %c0_3] : memref<8x256xf32, #tpu.memory_space<vmem>>, vector<8x256xf32>
    %9 = arith.index_cast %6 : i32 to index
    %c0_4 = arith.constant 0 : index
    %10 = vector.load %arg3[%9, %c0_4] : memref<8x256xf32, #tpu.memory_space<vmem>>, vector<8x256xf32>
    %cst_5 = arith.constant 0.000000e+00 : f32
    %11 = vector.broadcast %cst_5 : f32 to vector<8x256xf32>
    %12 = arith.subf %11, %8 : vector<8x256xf32>
    %cst_6 = arith.constant 0.000000e+00 : f32
    %13 = vector.broadcast %cst_6 : f32 to vector<8x256xf32>
    %14 = arith.maximumf %12, %13 : vector<8x256xf32>
    %15 = vector.broadcast %cst_6 : f32 to vector<8x256xf32>
    %16 = arith.subf %12, %15 : vector<8x256xf32>
    %17 = arith.cmpf one, %16, %16 : vector<8x256xf32>
    %18 = vector.broadcast %cst_6 : f32 to vector<8x256xf32>
    %19 = arith.addf %12, %18 : vector<8x256xf32>
    %20 = math.absf %16 : vector<8x256xf32>
    %cst_7 = arith.constant 0.000000e+00 : f32
    %21 = vector.broadcast %cst_7 : f32 to vector<8x256xf32>
    %22 = arith.subf %21, %20 : vector<8x256xf32>
    %23 = math.exp %22 : vector<8x256xf32>
    %24 = math.log1p %23 : vector<8x256xf32>
    %25 = arith.addf %14, %24 : vector<8x256xf32>
    %26 = arith.select %17, %19, %25 : vector<8x256xi1>, vector<8x256xf32>
    %cst_8 = arith.constant 0.000000e+00 : f32
    %27 = vector.broadcast %cst_8 : f32 to vector<8x256xf32>
    %28 = arith.subf %27, %26 : vector<8x256xf32>
    %29 = math.exp %28 : vector<8x256xf32>
    %cst_9 = arith.constant 1.000000e+00 : f32
    %30 = vector.broadcast %cst_9 : f32 to vector<8x256xf32>
    %31 = arith.subf %30, %8 : vector<8x256xf32>
    %cst_10 = arith.constant 0.000000e+00 : f32
    %32 = vector.broadcast %cst_10 : f32 to vector<8x256xf32>
    %33 = arith.subf %32, %31 : vector<8x256xf32>
    %cst_11 = arith.constant 0.000000e+00 : f32
    %34 = vector.broadcast %cst_11 : f32 to vector<8x256xf32>
    %35 = arith.maximumf %33, %34 : vector<8x256xf32>
    %36 = vector.broadcast %cst_11 : f32 to vector<8x256xf32>
    %37 = arith.subf %33, %36 : vector<8x256xf32>
    %38 = arith.cmpf one, %37, %37 : vector<8x256xf32>
    %39 = vector.broadcast %cst_11 : f32 to vector<8x256xf32>
    %40 = arith.addf %33, %39 : vector<8x256xf32>
    %41 = math.absf %37 : vector<8x256xf32>
    %cst_12 = arith.constant 0.000000e+00 : f32
    %42 = vector.broadcast %cst_12 : f32 to vector<8x256xf32>
    %43 = arith.subf %42, %41 : vector<8x256xf32>
    %44 = math.exp %43 : vector<8x256xf32>
    %45 = math.log1p %44 : vector<8x256xf32>
    %46 = arith.addf %35, %45 : vector<8x256xf32>
    %47 = arith.select %38, %40, %46 : vector<8x256xi1>, vector<8x256xf32>
    %cst_13 = arith.constant 0.000000e+00 : f32
    %48 = vector.broadcast %cst_13 : f32 to vector<8x256xf32>
    %49 = arith.subf %48, %47 : vector<8x256xf32>
    %cst_14 = arith.constant -0.699999988 : f32
    %50 = vector.broadcast %cst_14 : f32 to vector<8x256xf32>
    %51 = arith.mulf %50, %28 : vector<8x256xf32>
    %52 = arith.mulf %51, %10 : vector<8x256xf32>
    %53 = arith.mulf %29, %29 : vector<8x256xf32>
    %54 = arith.mulf %29, %53 : vector<8x256xf32>
    %cst_15 = arith.constant 3.000000e-01 : f32
    %55 = vector.broadcast %cst_15 : f32 to vector<8x256xf32>
    %56 = arith.mulf %55, %54 : vector<8x256xf32>
    %57 = arith.mulf %56, %49 : vector<8x256xf32>
    %cst_16 = arith.constant 1.000000e+00 : f32
    %58 = vector.broadcast %cst_16 : f32 to vector<8x256xf32>
    %59 = arith.subf %58, %10 : vector<8x256xf32>
    %60 = arith.mulf %57, %59 : vector<8x256xf32>
    %61 = arith.subf %52, %60 : vector<8x256xf32>
    %62 = vector.shape_cast %61 : vector<8x256xf32> to vector<1x8x256xf32>
    %cst_17 = arith.constant dense<0.000000e+00> : vector<8x256xf32>
    %63 = vector.multi_reduction <add>, %62, %cst_17 [0] : vector<1x8x256xf32> to vector<8x256xf32>
    %64 = arith.addf %4, %63 : vector<8x256xf32>
    %c1_i32 = arith.constant 1 : i32
    %65 = arith.addf %3, %64 : vector<8x256xf32>
    %c0_18 = arith.constant 0 : index
    %c0_19 = arith.constant 0 : index
    %66 = vector.load %arg4[%c0_18, %c0_19] : memref<8x256xf32, #tpu.memory_space<vmem>>, vector<8x256xf32>
    tpu.vector_store %arg4[%c0_18, %c0_19], %65 {strides = array<i32>} : memref<8x256xf32, #tpu.memory_space<vmem>>, vector<8x256xf32>,
    return
  }
  func.func @transform_0(%arg0: i32, %arg1: i32) -> (i32, i32) {
    %c1_i32 = arith.constant 1 : i32
    %0 = arith.muli %arg0, %c1_i32 : i32
    %1 = arith.addi %0, %arg1 : i32
    %c0_i32 = arith.constant 0 : i32
    %c0_i32_0 = arith.constant 0 : i32
    return %1, %c0_i32 : i32, i32
  }
  func.func @transform_1(%arg0: i32, %arg1: i32) -> (i32, i32) {
    %c1_i32 = arith.constant 1 : i32
    %0 = arith.muli %arg0, %c1_i32 : i32
    %1 = arith.addi %0, %arg1 : i32
    %c0_i32 = arith.constant 0 : i32
    %c0_i32_0 = arith.constant 0 : i32
    return %1, %c0_i32 : i32, i32
  }
  func.func @transform_2(%arg0: i32, %arg1: i32) -> (i32, i32) {
    %c0_i32 = arith.constant 0 : i32
    %c0_i32_0 = arith.constant 0 : i32
    return %arg0, %c0_i32 : i32, i32
  }
}

</mosaic_0001>

<bundles_post_ra>
// kernel: tpu_custom_call.1
= control target key start
LH: loop header
LB: loop body
LE: loop exit
PB: predicated region body
PF: predicated region fallthrough
CT: control target
= control target key end

     0   :  { %7 = vsyncpa [#allocation3], 0  ;;  %s355_s0 = inlined_call_operand.hbm [shape: f32[8,256], index: 0, kind: input, shape index: {}]   ;;  %s356_s1 = inlined_call_operand.hbm [shape: f32[8,256], index: 1, kind: input, shape index: {}]   ;;  %s357_s2 = inlined_call_operand.hbm [shape: f32[8,256], index: 2, kind: output, shape index: {}]  }
   0x1   :  { %8 = vsyncpa [#allocation6], 0 }
   0x2   :  { %9 = vsyncpa [#allocation4], 0  ;;  %s287_s9 = smov [#allocation2]   ;;  %s288_s11 = smov [#allocation5]  }
   0x3   :  { %s20_s10 = sshll.u32 %s287_s9, 4  ;;  %s34_s12 = sshll.u32 %s288_s11, 4  ;;  %s21_s10 = int_to_ptr.vmem [resolvable:$true] %s20_s10  ;;  %s35_s12 = int_to_ptr.vmem [resolvable:$true] %s34_s12 }
   0x4   :  { %s215_s15 = scalar_lea.hbm %s355_s0, 256 }
   0x5   :  { %p216_p0 = scmp.ne.s32.totalorder %s355_s0, %s215_s15  ;;  %p219_p1 = scmp.lt.u32.totalorder %s215_s15, %s355_s0 }
   0x7   :  { %p221_p2 = pnand %p219_p1, %p216_p0 }
   0x9   :  { %224 = shalt.err (!%p221_p2)
}
   0xa   :  { %s225_s20 = scalar_lea.vmem %s21_s10, 256  ;;  %p230_p4 = scmp.lt.s32.totalorder %s21_s10, %s21_s10 }
   0xb   :  { %p226_p3 = scmp.ne.s32.totalorder %s21_s10, %s225_s20  ;;  %p231_p5 = scmp.lt.s32.totalorder %s225_s20, %s225_s20 }
   0xd   :  { %p232_p6 = por %p231_p5, %p230_p4 }
   0xf   :  { %p233_p7 = pnand %p232_p6, %p226_p3 }
  0x11   :  { %236 = shalt.err (!%p233_p7)
}
  0x12   :  { %23 = dma.hbm_to_vmem [thread:$0]  %s355_s0, 256, %s21_s10, [#allocation3]  }
  0x13   :  { %s237_s25 = scalar_lea.hbm %s356_s1, 256 }
  0x14   :  { %p238_p8 = scmp.ne.s32.totalorder %s356_s1, %s237_s25  ;;  %p241_p9 = scmp.lt.u32.totalorder %s237_s25, %s356_s1 }
  0x16   :  { %p243_p10 = pnand %p241_p9, %p238_p8 }
  0x18   :  { %246 = shalt.err (!%p243_p10)
}
  0x19   :  { %s247_s30 = scalar_lea.vmem %s35_s12, 256  ;;  %p252_p12 = scmp.lt.s32.totalorder %s35_s12, %s35_s12 }
  0x1a   :  { %p248_p11 = scmp.ne.s32.totalorder %s35_s12, %s247_s30  ;;  %p253_p13 = scmp.lt.s32.totalorder %s247_s30, %s247_s30 }
  0x1c   :  { %p254_p0 = por %p253_p13, %p252_p12 }
  0x1e   :  { %p255_p1 = pnand %p254_p0, %p248_p11 }
  0x20   :  { %258 = shalt.err (!%p255_p1)
}
  0x21   :  { %37 = dma.hbm_to_vmem [thread:$0]  %s356_s1, 256, %s35_s12, [#allocation6]  }
  0x22   :  { %281 = dma.done.wait [#allocation3], 256  }
  0x23   :  { %282 = vsyncadd [#allocation3], 4294967040 }
  0x24   :  { %283 = dma.done.wait [#allocation6], 256  }
  0x25   :  { %284 = vsyncadd [#allocation6], 4294967040  ;;  %v57_v0 = vld [vmem:[#allocation2] sm:$0xff]  ;;  %v58_v1 = vld [vmem:[#allocation2 + $0x8] sm:$0xff]  ;;  %s289_s1 = smov [#allocation7]  }
  0x26   :  { %v63_v2 = vsub.f32 0.0, %v57_v0  ;;  %v107_v3 = vsub.f32 1.0, %v57_v0  ;;  %v64_v4 = vsub.f32 0.0, %v58_v1  ;;  %v108_v5 = vsub.f32 1.0, %v58_v1  ;;  %s181_s4 = sshll.u32 %s289_s1, 4  ;;  %s182_s4 = int_to_ptr.vmem [resolvable:$true] %s181_s4 }
  0x27   :  { %s259_s5 = scalar_lea.vmem %s182_s4, 256  ;;  %p264_p3 = scmp.lt.s32.totalorder %s182_s4, %s182_s4 }
  0x28   :  { %v71_v6 = vand.u32 2147483647, %v63_v2  ;;  %v329_v7 = vsub.f32 0.0, %v107_v3  ;;  %v72_v8 = vand.u32 2147483647, %v64_v4  ;;  %v331_v9 = vsub.f32 0.0, %v108_v5  ;;  %p260_p2 = scmp.ne.s32.totalorder %s182_s4, %s259_s5  ;;  %p265_p4 = scmp.lt.s32.totalorder %s259_s5, %s259_s5 }
  0x29   :  { %v65_v36 = vmax.f32 %v63_v2, 0.0  ;;  %v66_v40 = vmax.f32 %v64_v4, 0.0  ;;  %vm67_vm2 = vcmp.ne.f32.partialorder %v63_v2, %v63_v2  ;;  %vm68_vm3 = vcmp.ne.f32.partialorder %v64_v4, %v64_v4 }
  0x2a   :  { %v73_v10 = vsub.f32 0.0, %v71_v6  ;;  %v117_v11 = vand.u32 2147483647, %v329_v7  ;;  %v74_v12 = vsub.f32 0.0, %v72_v8  ;;  %v118_v13 = vand.u32 2147483647, %v331_v9  ;;  %p266_p5 = por %p265_p4, %p264_p3 }
  0x2b   :  { %v111_v0 = vmax.f32 %v329_v7, 0.0  ;;  %vm113_vm6 = vcmp.ne.f32.partialorder %v329_v7, %v329_v7  ;;  %vm114_vm7 = vcmp.ne.f32.partialorder %v331_v9, %v331_v9 }
  0x2c   :  { %v75_v14 = vmul.f32 1.442695, %v73_v10  ;;  %v119_v15 = vsub.f32 0.0, %v117_v11  ;;  %v77_v16 = vmul.f32 1.442695, %v74_v12  ;;  %v120_v17 = vsub.f32 0.0, %v118_v13  ;;  %p267_p6 = pnand %p266_p5, %p260_p2 }
  0x2d   :  { %v61_v13 = vld [vmem:[#allocation5] sm:$0xff] }
  0x2e   :  { %195 = vpow2.f32 %v75_v14  ;;  %v121_v18 = vmul.f32 1.442695, %v119_v15  ;;  %v123_v19 = vmul.f32 1.442695, %v120_v17 }
  0x2f   :  { %197 = vpow2.f32 %v77_v16 }
  0x30   :  { %199 = vpow2.f32 %v121_v18  ;;  %v62_v18 = vld [vmem:[#allocation5 + $0x8] sm:$0xff] }
  0x31   :  { %201 = vpow2.f32 %v123_v19 }
  0x38   :  { %v196_v20 = vpop.eup %195 }
  0x39   :  { %v198_v21 = vpop.eup %197  ;;  %v79_v22 = vadd.f32 1.0, %v196_v20  ;;  %v82_v26 = vmul.f32 -0.5, %v196_v20  ;;  %v85_v31 = vand.u32 2147483647, %v196_v20 }
  0x3a   :  { %v88_v23 = vadd.f32 1.0, %v198_v21  ;;  %v200_v24 = vpop.eup %199  ;;  %v91_v27 = vmul.f32 -0.5, %v198_v21  ;;  %v94_v33 = vand.u32 2147483647, %v198_v21 }
  0x3b   :  { %203 = vlog2.f32 %v79_v22  ;;  %v202_v25 = vpop.eup %201  ;;  %v125_v28 = vadd.f32 1.0, %v200_v24  ;;  %v83_v30 = vadd.f32 1.0, %v82_v26  ;;  %vm86_vm0 = vcmp.lt.f32.partialorder %v85_v31, 0.0004427343 }
  0x3c   :  { %205 = vlog2.f32 %v88_v23  ;;  %v134_v29 = vadd.f32 1.0, %v202_v25  ;;  %v92_v32 = vadd.f32 1.0, %v91_v27  ;;  %vm95_vm1 = vcmp.lt.f32.partialorder %v94_v33, 0.0004427343 }
  0x3d   :  { %207 = vlog2.f32 %v125_v28  ;;  %v84_v34 = vmul.f32 %v196_v20, %v83_v30  ;;  %v128_v41 = vmul.f32 -0.5, %v200_v24  ;;  %v137_v44 = vmul.f32 -0.5, %v202_v25 }
  0x3e   :  { %209 = vlog2.f32 %v134_v29  ;;  %v93_v37 = vmul.f32 %v198_v21, %v92_v32  ;;  %v131_v52 = vand.u32 2147483647, %v200_v24  ;;  %v140_v57 = vand.u32 2147483647, %v202_v25 }
  0x3f   :  { %v129_v49 = vadd.f32 1.0, %v128_v41  ;;  %v138_v54 = vadd.f32 1.0, %v137_v44  ;;  %v161_v23 = vsub.f32 1.0, %v61_v13 }
  0x40   :  { %vm132_vm4 = vcmp.lt.f32.partialorder %v131_v52, 0.0004427343  ;;  %vm141_vm5 = vcmp.lt.f32.partialorder %v140_v57, 0.0004427343 }
  0x41   :  { %v130_v60 = vmul.f32 %v200_v24, %v129_v49  ;;  %v139_v63 = vmul.f32 %v202_v25, %v138_v54  ;;  %v162_v25 = vsub.f32 1.0, %v62_v18 }
  0x45   :  { %v204_v35 = vpop.eup %203 }
  0x46   :  { %v206_v38 = vpop.eup %205  ;;  %v81_v39 = vmul.f32 0.6931472, %v204_v35 }
  0x47   :  { %v90_v42 = vmul.f32 0.6931472, %v206_v38  ;;  %v208_v50 = vpop.eup %207 }
  0x48   :  { %v87_v43 = vsel %vm86_vm0, %v84_v34, %v81_v39  ;;  %v210_v55 = vpop.eup %209  ;;  %v127_v59 = vmul.f32 0.6931472, %v208_v50 }
  0x49   :  { %v97_v45 = vadd.f32 %v87_v43, %v65_v36  ;;  %v96_v46 = vsel %vm95_vm1, %v93_v37, %v90_v42  ;;  %v136_v62 = vmul.f32 0.6931472, %v210_v55 }
  0x4a   :  { %v98_v47 = vadd.f32 %v96_v46, %v66_v40  ;;  %v133_v1 = vsel %vm132_vm4, %v130_v60, %v127_v59 }
  0x4b   :  { %v99_v48 = vsel %vm67_vm2, %v63_v2, %v97_v45  ;;  %v112_v2 = vmax.f32 %v331_v9, 0.0  ;;  %v142_v3 = vsel %vm141_vm5, %v139_v63, %v136_v62 }
  0x4c   :  { %v101_v51 = vsub.f32 0.0, %v99_v48  ;;  %v100_v53 = vsel %vm68_vm3, %v64_v4, %v98_v47  ;;  %v143_v4 = vadd.f32 %v133_v1, %v111_v0 }
  0x4d   :  { %v102_v56 = vsub.f32 0.0, %v100_v53  ;;  %v144_v5 = vadd.f32 %v142_v3, %v112_v2 }
  0x4e   :  { %v103_v58 = vmul.f32 1.442695, %v101_v51  ;;  %v145_v8 = vsel %vm113_vm6, %v329_v7, %v143_v4  ;;  %v149_v16 = vmul.f32 -0.7, %v101_v51 }
  0x4f   :  { %v105_v61 = vmul.f32 1.442695, %v102_v56  ;;  %v146_v12 = vsel %vm114_vm7, %v331_v9, %v144_v5  ;;  %v147_v15 = vsub.f32 0.0, %v145_v8  ;;  %v150_v20 = vmul.f32 -0.7, %v102_v56 }
  0x50   :  { %211 = vpow2.f32 %v103_v58  ;;  %v148_v19 = vsub.f32 0.0, %v146_v12  ;;  %v151_v26 = vmul.f32 %v149_v16, %v61_v13 }
  0x51   :  { %213 = vpow2.f32 %v105_v61  ;;  %v152_v7 = vmul.f32 %v150_v20, %v62_v18 }
  0x5a   :  { %v212_v6 = vpop.eup %211 }
  0x5b   :  { %v214_v10 = vpop.eup %213  ;;  %v153_v11 = vmul.f32 %v212_v6, %v212_v6 }
  0x5c   :  { %v154_v14 = vmul.f32 %v214_v10, %v214_v10 }
  0x5d   :  { %v155_v17 = vmul.f32 %v212_v6, %v153_v11 }
  0x5e   :  { %v156_v21 = vmul.f32 %v214_v10, %v154_v14 }
  0x5f   :  { %v157_v22 = vmul.f32 0.3, %v155_v17 }
  0x60   :  { %v158_v24 = vmul.f32 0.3, %v156_v21 }
  0x61   :  { %v159_v27 = vmul.f32 %v157_v22, %v147_v15 }
  0x62   :  { %v160_v28 = vmul.f32 %v158_v24, %v148_v19 }
  0x63   :  { %v163_v29 = vmul.f32 %v161_v23, %v159_v27 }
  0x64   :  { %v164_v30 = vmul.f32 %v162_v25, %v160_v28 }
  0x65   :  { %v165_v9 = vsub.f32 %v151_v26, %v163_v29 }
  0x66   :  { %v166_v31 = vsub.f32 %v152_v7, %v164_v30 }
  0x67   :  { %173 = vst [vmem:[#allocation7] sm:$0xff] %v165_v9 }
  0x68   :  { %174 = vst [vmem:[#allocation7 + $0x8] sm:$0xff] %v166_v31 }
  0x69   :  { %270 = shalt.err (!%p267_p6)
}
  0x6a   :  { %s271_s8 = scalar_lea.hbm %s357_s2, 256 }
  0x6b   :  { %p272_p7 = scmp.ne.s32.totalorder %s357_s2, %s271_s8  ;;  %p275_p8 = scmp.lt.u32.totalorder %s271_s8, %s357_s2 }
  0x6d   :  { %p277_p9 = pnand %p275_p8, %p272_p7 }
  0x6f   :  { %280 = shalt.err (!%p277_p9)
}
  0x70   :  { %184 = dma.vmem_to_hbm [thread:$0]  %s182_s4, 256, %s357_s2, [#allocation4]  }
  0x71   :  { %285 = dma.done.wait [#allocation4], 256  }
  0x72   :  { %286 = vsyncadd [#allocation4], 4294967040 }
  0x73   :  { %188 = vsyncpa [#allocation3], 1 }
  0x74   :  { %189 = vsyncpa [#allocation6], 1 }
  0x75   :  { %190 = vsyncpa [#allocation4], 1 }

</bundles_post_ra>
